<compile_context>
chip_gen: v7x
topology: tpu7x:2x2x1
jax: 0.10.0
libtpu: 0.0.40
codegen_flags: <defaults>
</compile_context>

<pallas_src>
import functools

import jax
import jax.numpy as jnp
from jax.experimental import pallas as pl
from jax.experimental.pallas import tpu as pltpu


def _round_up(x, m):
    return ((x + m - 1) // m) * m


def _xlogx(x):
    # t * log(t) with the convention 0*log(0) = 0 (only used when apply_nonlin=False)
    safe = jnp.where(x > 0, x, 1.0)
    return jnp.where(x > 0, x * jnp.log(safe), 0.0)


def _tpu_params():
    """(vmem_capacity_bytes, has_multiple_tensorcores) with safe fallbacks."""
    vmem_bytes = 64 << 20   # conservative (v7x) default
    multi_core = False
    try:
        info = pltpu.get_tpu_info()
        vmem_bytes = int(getattr(info, "vmem_capacity_bytes", vmem_bytes))
    except Exception:
        pass
    try:
        kind = jax.devices()[0].device_kind.lower()
        # megacore (2 TensorCores per chip) generations
        multi_core = any(tag in kind for tag in ("v4", "v5p", "v7"))
    except Exception:
        pass
    return vmem_bytes, multi_core


def _jsd_kernel(p_ref, q_ref, out_ref, *, apply_nonlin, hw_valid, tr, tr_out, masked):
    # Block shape: (bn, C, tr, 128). Channels on a major axis -> channel reductions are
    # cross-vreg VPU max/add; every (tr, 128) tile is a fully dense f32 vreg tile.
    j = pl.program_id(1)                  # spatial tile index (reduction axis, "arbitrary")
    last = pl.num_programs(1) - 1

    @pl.when(j == 0)
    def _():
        out_ref[...] = jnp.zeros_like(out_ref)

    x = p_ref[...].astype(jnp.float32)
    y = q_ref[...].astype(jnp.float32)

    if apply_nonlin:
        # fused softmax / log_softmax over the channel axis (axis=1)
        xs = x - jnp.max(x, axis=1, keepdims=True)
        ys = y - jnp.max(y, axis=1, keepdims=True)
        ex = jnp.exp(xs)
        ey = jnp.exp(ys)
        dx = jnp.sum(ex, axis=1, keepdims=True)     # (bn, 1, tr, 128)
        dy = jnp.sum(ey, axis=1, keepdims=True)
        # one exact reciprocal per column instead of C broadcast divides
        p = ex * (1.0 / dx)
        q = ey * (1.0 / dy)
        log_p = xs - jnp.log(dx)                    # one log per column, no log(p)
        log_q = ys - jnp.log(dy)
        m = jnp.maximum((p + q) * 0.5, 1e-7)        # clip(min=1e-7)
        log_m = jnp.log(m)
        s = p * (log_p - log_m) + q * (log_q - log_m)
    else:
        p, q = x, y
        m = jnp.maximum((p + q) * 0.5, 1e-7)
        log_m = jnp.log(m)
        s = (_xlogx(p) - p * log_m) + (_xlogx(q) - q * log_m)

    # Per-step reduction over batch-block and channel (both major axes -> cheap vreg adds);
    # keeps the running accumulator at (tr_out, 128) instead of a block-sized RMW scratch.
    red = s.sum(axis=1).sum(axis=0)                 # (tr, 128)

    def _fold(r):
        if tr == tr_out:
            return r
        # sublane-aligned split (tr is a multiple of 8 here) + cross-vreg add
        return r.reshape(tr // tr_out, tr_out, 128).sum(axis=0)

    if masked:
        # Spatial padding exists only in the last spatial tile: gate all mask work there.
        @pl.when(j != last)
        def _():
            out_ref[0] += _fold(red)

        @pl.when(j == last)
        def _():
            r_idx = jax.lax.broadcasted_iota(jnp.int32, (tr, 128), 0)
            l_idx = jax.lax.broadcasted_iota(jnp.int32, (tr, 128), 1)
            flat = (j * tr + r_idx) * 128 + l_idx   # flattened H*W index
            out_ref[0] += _fold(jnp.where(flat < hw_valid, red, 0.0))
    else:
        out_ref[0] += _fold(red)


def js_div_loss(pred_p, pred_q, *, apply_nonlin=True, reduction="mean"):
    """pred_p, pred_q: NCHW logits. Returns scalar JS-divergence loss (float32)."""
    assert pred_p.shape == pred_q.shape
    N, C, H, W = pred_p.shape
    HW = H * W

    vmem_bytes, multi_core = _tpu_params()
    # per-input f32 block budget: bigger on 128 MiB parts (v5e/v6e), smaller on v7x (64 MiB)
    budget = (2 << 20) if vmem_bytes >= (100 << 20) else (1 << 20)
    vmem_limit = int(max(32 << 20, min((vmem_bytes * 3) // 4, 64 << 20)))

    # ---- spatial tiling: HW -> (rows, 128); tr rows per step (multiple of 8 when possible)
    rows = pl.cdiv(HW, 128)
    if rows < 8:
        tr = rows
        rows_p = rows
    else:
        rows8 = _round_up(rows, 8)
        tr_cap = max(8, min(rows8, budget // (C * 128 * 4)))
        tr = 8
        d = 16
        while d <= min(rows8, tr_cap):
            if rows8 % d == 0:
                tr = d
            d += 8
        rows_p = rows8
    n_s = rows_p // tr
    HW_p = rows_p * 128
    masked = HW_p != HW
    tr_out = 8 if tr % 8 == 0 else tr

    # ---- batch tiling: fill the remaining block budget; only hold batch blocks back (>=2,
    # even count) on multi-TensorCore parts so single-core chips keep the biggest blocks.
    per_image_bytes = C * tr * 128 * 4
    bn_cap = max(1, budget // per_image_bytes)
    if multi_core and N >= 2:
        bn_cap = min(bn_cap, max(1, N // 2))
    bn = 1
    for cand in range(min(N, bn_cap), 0, -1):
        if N % cand == 0:
            bn = cand
            break
    if multi_core and N >= 2 and (N // bn) % 2 != 0:
        for cand in range(bn, 0, -1):
            if N % cand == 0 and (N // cand) % 2 == 0:
                bn = cand
                break
    nb = N // bn

    # NCHW -> (N, C, rows_p, 128): pure minor-dim split/merge, no HBM transpose.
    p3 = pred_p.reshape(N, C, HW)
    q3 = pred_q.reshape(N, C, HW)
    if masked:
        p3 = jnp.pad(p3, ((0, 0), (0, 0), (0, HW_p - HW)))
        q3 = jnp.pad(q3, ((0, 0), (0, 0), (0, HW_p - HW)))
    p4 = p3.reshape(N, C, rows_p, 128)
    q4 = q3.reshape(N, C, rows_p, 128)

    kernel = functools.partial(
        _jsd_kernel,
        apply_nonlin=apply_nonlin,
        hw_valid=HW,
        tr=tr,
        tr_out=tr_out,
        masked=masked,
    )

    partials = pl.pallas_call(
        kernel,
        out_shape=jax.ShapeDtypeStruct((nb, tr_out, 128), jnp.float32),
        grid_spec=pltpu.PrefetchScalarGridSpec(
            num_scalar_prefetch=0,
            grid=(nb, n_s),
            in_specs=[
                pl.BlockSpec((bn, C, tr, 128), lambda i, j: (i, 0, j, 0)),
                pl.BlockSpec((bn, C, tr, 128), lambda i, j: (i, 0, j, 0)),
            ],
            out_specs=pl.BlockSpec((1, tr_out, 128), lambda i, j: (i, 0, 0)),
        ),
        compiler_params=pltpu.CompilerParams(
            dimension_semantics=("parallel", "arbitrary"),
            vmem_limit_bytes=vmem_limit,
        ),
    )(p4, q4)

    total = partials.sum()   # tiny final cross-lane reduce in the wrapper

    # scalings mirror torch.nn.KLDivLoss reductions applied to both KL terms, then /2
    if reduction == "mean":
        return total / jnp.float32(2.0 * N * C * H * W)
    elif reduction == "batchmean":
        return total / jnp.float32(2.0 * N)
    elif reduction == "sum":
        return total / jnp.float32(2.0)
    else:
        # TODO(synk): reduction='none' (elementwise KLDiv output tensor) is not implemented here.
        raise NotImplementedError(f"reduction={reduction!r}")


def _reference(pred_p, pred_q):
    p = jax.nn.softmax(pred_p.astype(jnp.float32), axis=1)
    q = jax.nn.softmax(pred_q.astype(jnp.float32), axis=1)
    m = jnp.maximum((p + q) / 2.0, 1e-7)
    log_m = jnp.log(m)
    kl1 = jnp.mean(p * (jnp.log(p) - log_m))
    kl2 = jnp.mean(q * (jnp.log(q) - log_m))
    return (kl1 + kl2) / 2.0


if __name__ == "__main__":
    key = jax.random.PRNGKey(0)
    k1, k2 = jax.random.split(key)
    # NCHW logits, small shapes
    pred_p = jax.random.normal(k1, (2, 4, 16, 16), dtype=jnp.float32)
    pred_q = jax.random.normal(k2, (2, 4, 16, 16), dtype=jnp.float32)

    loss = jax.block_until_ready(js_div_loss(pred_p, pred_q))
    ref = jax.block_until_ready(_reference(pred_p, pred_q))

    assert jnp.allclose(loss, ref, rtol=2e-5, atol=1e-6), (loss, ref)
    print("KERNEL_OK")
</pallas_src>

<mosaic_0001>
module attributes {stable_mosaic.version = 11 : i64} {
  func.func @_jsd_kernel(%arg0: i32, %arg1: i32, %arg2: memref<2x4x2x128xf32, #tpu.memory_space<vmem>>, %arg3: memref<2x4x2x128xf32, #tpu.memory_space<vmem>>, %arg4: memref<1x2x128xf32, #tpu.memory_space<vmem>>) attributes {dimension_semantics = [#tpu.dimension_semantics<parallel>, #tpu.dimension_semantics<arbitrary>], iteration_bounds = array<i64: 1, 1>, scalar_prefetch = 0 : i64, scratch_operands = 0 : i64, tpu.core_type = #tpu.core_type<tc>, window_params = [{transform_indices = @transform_0, window_bounds = array<i64: 2, 4, 2, 128>}, {transform_indices = @transform_1, window_bounds = array<i64: 2, 4, 2, 128>}, {transform_indices = @transform_2, window_bounds = array<i64: 1, 2, 128>}]} {
    %c0_i32 = arith.constant 0 : i32
    %0 = arith.cmpi eq, %arg1, %c0_i32 : i32
    %1 = arith.extui %0 : i1 to i32
    %c0_i32_0 = arith.constant 0 : i32
    %2 = arith.cmpi ne, %1, %c0_i32_0 : i32
    scf.if %2 {
      %cst_23 = arith.constant 0.000000e+00 : f32
      %52 = vector.broadcast %cst_23 : f32 to vector<1x2x128xf32>
      %c0_24 = arith.constant 0 : index
      %c0_25 = arith.constant 0 : index
      %c0_26 = arith.constant 0 : index
      %53 = vector.load %arg4[%c0_24, %c0_25, %c0_26] : memref<1x2x128xf32, #tpu.memory_space<vmem>>, vector<1x2x128xf32>
      tpu.vector_store %arg4[%c0_24, %c0_25, %c0_26], %52 {strides = array<i32>} : memref<1x2x128xf32, #tpu.memory_space<vmem>>, vector<1x2x128xf32>,
    } else {
    }
    %c0 = arith.constant 0 : index
    %c0_1 = arith.constant 0 : index
    %c0_2 = arith.constant 0 : index
    %c0_3 = arith.constant 0 : index
    %3 = vector.load %arg2[%c0, %c0_1, %c0_2, %c0_3] : memref<2x4x2x128xf32, #tpu.memory_space<vmem>>, vector<2x4x2x128xf32>
    %c0_4 = arith.constant 0 : index
    %c0_5 = arith.constant 0 : index
    %c0_6 = arith.constant 0 : index
    %c0_7 = arith.constant 0 : index
    %4 = vector.load %arg3[%c0_4, %c0_5, %c0_6, %c0_7] : memref<2x4x2x128xf32, #tpu.memory_space<vmem>>, vector<2x4x2x128xf32>
    %cst = arith.constant dense<0xFF800000> : vector<2x2x128xf32>
    %5 = vector.multi_reduction <maximumf>, %3, %cst [1] : vector<2x4x2x128xf32> to vector<2x2x128xf32>
    %6 = vector.shape_cast %5 : vector<2x2x128xf32> to vector<2x1x2x128xf32>
    %7 = vector.broadcast %6 : vector<2x1x2x128xf32> to vector<2x4x2x128xf32>
    %8 = arith.subf %3, %7 : vector<2x4x2x128xf32>
    %cst_8 = arith.constant dense<0xFF800000> : vector<2x2x128xf32>
    %9 = vector.multi_reduction <maximumf>, %4, %cst_8 [1] : vector<2x4x2x128xf32> to vector<2x2x128xf32>
    %10 = vector.shape_cast %9 : vector<2x2x128xf32> to vector<2x1x2x128xf32>
    %11 = vector.broadcast %10 : vector<2x1x2x128xf32> to vector<2x4x2x128xf32>
    %12 = arith.subf %4, %11 : vector<2x4x2x128xf32>
    %13 = math.exp %8 : vector<2x4x2x128xf32>
    %14 = math.exp %12 : vector<2x4x2x128xf32>
    %cst_9 = arith.constant dense<0.000000e+00> : vector<2x2x128xf32>
    %15 = vector.multi_reduction <add>, %13, %cst_9 [1] : vector<2x4x2x128xf32> to vector<2x2x128xf32>
    %16 = vector.shape_cast %15 : vector<2x2x128xf32> to vector<2x1x2x128xf32>
    %cst_10 = arith.constant dense<0.000000e+00> : vector<2x2x128xf32>
    %17 = vector.multi_reduction <add>, %14, %cst_10 [1] : vector<2x4x2x128xf32> to vector<2x2x128xf32>
    %18 = vector.shape_cast %17 : vector<2x2x128xf32> to vector<2x1x2x128xf32>
    %cst_11 = arith.constant 1.000000e+00 : f32
    %19 = vector.broadcast %cst_11 : f32 to vector<2x1x2x128xf32>
    %20 = arith.divf %19, %16 : vector<2x1x2x128xf32>
    %21 = vector.broadcast %20 : vector<2x1x2x128xf32> to vector<2x4x2x128xf32>
    %22 = arith.mulf %13, %21 : vector<2x4x2x128xf32>
    %cst_12 = arith.constant 1.000000e+00 : f32
    %23 = vector.broadcast %cst_12 : f32 to vector<2x1x2x128xf32>
    %24 = arith.divf %23, %18 : vector<2x1x2x128xf32>
    %25 = vector.broadcast %24 : vector<2x1x2x128xf32> to vector<2x4x2x128xf32>
    %26 = arith.mulf %14, %25 : vector<2x4x2x128xf32>
    %27 = math.log %16 : vector<2x1x2x128xf32>
    %28 = vector.broadcast %27 : vector<2x1x2x128xf32> to vector<2x4x2x128xf32>
    %29 = arith.subf %8, %28 : vector<2x4x2x128xf32>
    %30 = math.log %18 : vector<2x1x2x128xf32>
    %31 = vector.broadcast %30 : vector<2x1x2x128xf32> to vector<2x4x2x128xf32>
    %32 = arith.subf %12, %31 : vector<2x4x2x128xf32>
    %33 = arith.addf %22, %26 : vector<2x4x2x128xf32>
    %cst_13 = arith.constant 5.000000e-01 : f32
    %34 = vector.broadcast %cst_13 : f32 to vector<2x4x2x128xf32>
    %35 = arith.mulf %33, %34 : vector<2x4x2x128xf32>
    %cst_14 = arith.constant 1.000000e-07 : f32
    %36 = vector.broadcast %cst_14 : f32 to vector<2x4x2x128xf32>
    %37 = arith.maximumf %35, %36 : vector<2x4x2x128xf32>
    %38 = math.log %37 : vector<2x4x2x128xf32>
    %39 = arith.subf %29, %38 : vector<2x4x2x128xf32>
    %40 = arith.mulf %22, %39 : vector<2x4x2x128xf32>
    %41 = arith.subf %32, %38 : vector<2x4x2x128xf32>
    %42 = arith.mulf %26, %41 : vector<2x4x2x128xf32>
    %43 = arith.addf %40, %42 : vector<2x4x2x128xf32>
    %cst_15 = arith.constant dense<0.000000e+00> : vector<2x2x128xf32>
    %44 = vector.multi_reduction <add>, %43, %cst_15 [1] : vector<2x4x2x128xf32> to vector<2x2x128xf32>
    %cst_16 = arith.constant dense<0.000000e+00> : vector<2x128xf32>
    %45 = vector.multi_reduction <add>, %44, %cst_16 [0] : vector<2x2x128xf32> to vector<2x128xf32>
    %c0_17 = arith.constant 0 : index
    %c0_18 = arith.constant 0 : index
    %c0_19 = arith.constant 0 : index
    %46 = vector.load %arg4[%c0_17, %c0_18, %c0_19] : memref<1x2x128xf32, #tpu.memory_space<vmem>>, vector<1x2x128xf32>
    %47 = vector.shape_cast %46 : vector<1x2x128xf32> to vector<2x128xf32>
    %48 = arith.addf %47, %45 : vector<2x128xf32>
    %c0_20 = arith.constant 0 : index
    %c0_21 = arith.constant 0 : index
    %c0_22 = arith.constant 0 : index
    %49 = vector.load %arg4[%c0_20, %c0_21, %c0_22] : memref<1x2x128xf32, #tpu.memory_space<vmem>>, vector<1x2x128xf32>
    %50 = vector.shape_cast %49 : vector<1x2x128xf32> to vector<2x128xf32>
    %51 = vector.shape_cast %48 : vector<2x128xf32> to vector<1x2x128xf32>
    tpu.vector_store %arg4[%c0_20, %c0_21, %c0_22], %51 {strides = array<i32>} : memref<1x2x128xf32, #tpu.memory_space<vmem>>, vector<1x2x128xf32>,
    return
  }
  func.func @transform_0(%arg0: i32, %arg1: i32) -> (i32, i32, i32, i32) {
    %c0_i32 = arith.constant 0 : i32
    %c0_i32_0 = arith.constant 0 : i32
    %c0_i32_1 = arith.constant 0 : i32
    return %arg0, %c0_i32, %arg1, %c0_i32_0 : i32, i32, i32, i32
  }
  func.func @transform_1(%arg0: i32, %arg1: i32) -> (i32, i32, i32, i32) {
    %c0_i32 = arith.constant 0 : i32
    %c0_i32_0 = arith.constant 0 : i32
    %c0_i32_1 = arith.constant 0 : i32
    return %arg0, %c0_i32, %arg1, %c0_i32_0 : i32, i32, i32, i32
  }
  func.func @transform_2(%arg0: i32, %arg1: i32) -> (i32, i32, i32) {
    %c0_i32 = arith.constant 0 : i32
    %c0_i32_0 = arith.constant 0 : i32
    %c0_i32_1 = arith.constant 0 : i32
    return %arg0, %c0_i32, %c0_i32_0 : i32, i32, i32
  }
}

</mosaic_0001>

<bundles_post_ra>
// kernel: tpu_custom_call.1
= control target key start
LH: loop header
LB: loop body
LE: loop exit
PB: predicated region body
PF: predicated region fallthrough
CT: control target
= control target key end

     0   :  { %7 = vsyncpa [#allocation3], 0  ;;  %s699_s0 = inlined_call_operand.hbm [shape: f32[2,4,2,128], index: 0, kind: input, shape index: {}]   ;;  %s700_s1 = inlined_call_operand.hbm [shape: f32[2,4,2,128], index: 1, kind: input, shape index: {}]   ;;  %s701_s2 = inlined_call_operand.hbm [shape: f32[1,2,128], index: 2, kind: output, shape index: {}]  }
   0x1   :  { %8 = vsyncpa [#allocation6], 0 }
   0x2   :  { %9 = vsyncpa [#allocation4], 0  ;;  %s472_s9 = smov [#allocation2]   ;;  %s400_s13 = scalar_lea.hbm %s699_s0, 256 }
   0x3   :  { %s15_s10 = sshll.u32 %s472_s9, 4  ;;  %p401_p0 = scmp.ne.s32.totalorder %s699_s0, %s400_s13  ;;  %s16_s10 = int_to_ptr.vmem [resolvable:$true] %s15_s10 }
   0x4   :  { %p404_p1 = scmp.lt.u32.totalorder %s400_s13, %s699_s0 }
   0x6   :  { %p406_p2 = pnand %p404_p1, %p401_p0 }
   0x8   :  { %409 = shalt.err (!%p406_p2)
}
   0x9   :  { %s410_s18 = scalar_lea.vmem %s16_s10, 256  ;;  %p415_p4 = scmp.lt.s32.totalorder %s16_s10, %s16_s10 }
   0xa   :  { %p411_p3 = scmp.ne.s32.totalorder %s16_s10, %s410_s18  ;;  %p416_p5 = scmp.lt.s32.totalorder %s410_s18, %s410_s18 }
   0xc   :  { %p417_p6 = por %p416_p5, %p415_p4 }
   0xe   :  { %p418_p7 = pnand %p417_p6, %p411_p3 }
  0x10   :  { %421 = shalt.err (!%p418_p7)
}
  0x11   :  { %s473_s19 = smov 32   ;;  %s474_s20 = smov 2  }
  0x12   :  { %21 = dma.hbm_to_vmem [thread:$0]  %s699_s0, 256, %s16_s10, [#allocation3], %s473_s19, %s473_s19, %s474_s20  }
  0x13   :  { %s475_s23 = smov [#allocation5]   ;;  %s422_s27 = scalar_lea.hbm %s700_s1, 256 }
  0x14   :  { %s27_s24 = sshll.u32 %s475_s23, 4  ;;  %p423_p8 = scmp.ne.s32.totalorder %s700_s1, %s422_s27  ;;  %s28_s24 = int_to_ptr.vmem [resolvable:$true] %s27_s24 }
  0x15   :  { %p426_p9 = scmp.lt.u32.totalorder %s422_s27, %s700_s1 }
  0x17   :  { %p428_p10 = pnand %p426_p9, %p423_p8 }
  0x19   :  { %431 = shalt.err (!%p428_p10)
}
  0x1a   :  { %s432_s4 = scalar_lea.vmem %s28_s24, 256  ;;  %p437_p12 = scmp.lt.s32.totalorder %s28_s24, %s28_s24 }
  0x1b   :  { %p433_p11 = scmp.ne.s32.totalorder %s28_s24, %s432_s4  ;;  %p438_p13 = scmp.lt.s32.totalorder %s432_s4, %s432_s4 }
  0x1d   :  { %p439_p0 = por %p438_p13, %p437_p12 }
  0x1f   :  { %p440_p1 = pnand %p439_p0, %p433_p11 }
  0x21   :  { %443 = shalt.err (!%p440_p1)
}
  0x22   :  { %33 = dma.hbm_to_vmem [thread:$0]  %s700_s1, 256, %s28_s24, [#allocation6], %s473_s19, %s473_s19, %s474_s20  }
  0x23   :  { %466 = dma.done.wait [#allocation3], 256  }
  0x24   :  { %467 = vsyncadd [#allocation3], 4294967040 }
  0x25   :  { %468 = dma.done.wait [#allocation6], 256  }
  0x26   :  { %469 = vsyncadd [#allocation6], 4294967040  ;;  %v476_v0 = vmov 0.0   ;;  %v45_v1 = vld [vmem:[#allocation2] sm:$0x3]  ;;  %vm61_vm0 = vcmask 1041408  }
  0x27   :  { %44 = vst [vmem:[#allocation7] sm:$0x3] %v476_v0  ;;  %v46_v2 = vld [vmem:[#allocation2 + $0x2] sm:$0x3]  ;;  %v47_v3 = vld [vmem:[#allocation2 + $0x4] sm:$0x3] }
  0x28   :  { %v48_v4 = vld [vmem:[#allocation2 + $0x6] sm:$0x3]  ;;  %v49_v5 = vld [vmem:[#allocation2 + $0x8] sm:$0x3]  ;;  %v50_v6 = vld [vmem:[#allocation2 + $0xa] sm:$0x3] }
  0x29   :  { %v51_v7 = vld [vmem:[#allocation2 + $0xc] sm:$0x3]  ;;  %v52_v8 = vld [vmem:[#allocation2 + $0xe] sm:$0x3]  ;;  %v53_v9 = vld [vmem:[#allocation5] sm:$0x3] }
  0x2a   :  { %v54_v10 = vld [vmem:[#allocation5 + $0x2] sm:$0x3]  ;;  %v55_v11 = vld [vmem:[#allocation5 + $0x4] sm:$0x3]  ;;  %v62_v12 = vsel %vm61_vm0, %v45_v1, -inf  ;;  %v63_v13 = vsel %vm61_vm0, %v46_v2, -inf }
  0x2b   :  { %v64_v14 = vsel %vm61_vm0, %v47_v3, -inf  ;;  %v66_v15 = vsel %vm61_vm0, %v48_v4, -inf  ;;  %v56_v16 = vld [vmem:[#allocation5 + $0x6] sm:$0x3]  ;;  %v57_v17 = vld [vmem:[#allocation5 + $0x8] sm:$0x3] }
  0x2c   :  { %v65_v18 = vmax.f32 %v62_v12, %v64_v14  ;;  %v67_v19 = vmax.f32 %v63_v13, %v66_v15  ;;  %v69_v20 = vsel %vm61_vm0, %v49_v5, -inf  ;;  %v70_v21 = vsel %vm61_vm0, %v50_v6, -inf  ;;  %v58_v22 = vld [vmem:[#allocation5 + $0xa] sm:$0x3]  ;;  %v59_v27 = vld [vmem:[#allocation5 + $0xc] sm:$0x3] }
  0x2d   :  { %v71_v23 = vsel %vm61_vm0, %v51_v7, -inf  ;;  %v73_v24 = vsel %vm61_vm0, %v52_v8, -inf  ;;  %v84_v25 = vsel %vm61_vm0, %v53_v9, -inf  ;;  %v85_v26 = vsel %vm61_vm0, %v54_v10, -inf  ;;  %v60_v28 = vld [vmem:[#allocation5 + $0xe] sm:$0x3] }
  0x2e   :  { %v68_v29 = vmax.f32 %v65_v18, %v67_v19  ;;  %v72_v30 = vmax.f32 %v69_v20, %v71_v23  ;;  %v74_v31 = vmax.f32 %v70_v21, %v73_v24  ;;  %v86_v32 = vsel %vm61_vm0, %v55_v11, -inf  ;;  %s477_s1 = smov [#allocation7]  }
  0x2f   :  { %v87_v33 = vmax.f32 %v84_v25, %v86_v32  ;;  %v88_v34 = vsel %vm61_vm0, %v56_v16, -inf  ;;  %v91_v35 = vsel %vm61_vm0, %v57_v17, -inf  ;;  %v92_v39 = vsel %vm61_vm0, %v58_v22, -inf  ;;  %s320_s6 = sshll.u32 %s477_s1, 4  ;;  %s321_s6 = int_to_ptr.vmem [resolvable:$true] %s320_s6 }
  0x30   :  { %v75_v36 = vmax.f32 %v72_v30, %v74_v31  ;;  %v530_v37 = vsub.f32 %v45_v1, %v68_v29  ;;  %v532_v38 = vsub.f32 %v46_v2, %v68_v29  ;;  %v535_v40 = vsub.f32 %v47_v3, %v68_v29  ;;  %s444_s7 = scalar_lea.vmem %s321_s6, 32  ;;  %p449_p3 = scmp.lt.s32.totalorder %s321_s6, %s321_s6 }
  0x31   :  { %v89_v41 = vmax.f32 %v85_v26, %v88_v34  ;;  %v93_v42 = vsel %vm61_vm0, %v59_v27, -inf  ;;  %v95_v43 = vsel %vm61_vm0, %v60_v28, -inf  ;;  %v539_v44 = vsub.f32 %v48_v4, %v68_v29  ;;  %p445_p2 = scmp.ne.s32.totalorder %s321_s6, %s444_s7  ;;  %p450_p4 = scmp.lt.s32.totalorder %s444_s7, %s444_s7 }
  0x32   :  { %v541_v45 = vsub.f32 %v49_v5, %v75_v36  ;;  %v94_v47 = vmax.f32 %v91_v35, %v93_v42  ;;  %v96_v48 = vmax.f32 %v92_v39, %v95_v43  ;;  %v106_v49 = vmul.f32 1.442695, %v530_v37 }
  0x33   :  { %v90_v46 = vmax.f32 %v87_v33, %v89_v41  ;;  %v544_v50 = vsub.f32 %v50_v6, %v75_v36  ;;  %v108_v51 = vmul.f32 1.442695, %v532_v38  ;;  %v547_v52 = vsub.f32 %v51_v7, %v75_v36  ;;  %p451_p5 = por %p450_p4, %p449_p3 }
  0x34   :  { %v110_v53 = vmul.f32 1.442695, %v535_v40  ;;  %v550_v54 = vsub.f32 %v52_v8, %v75_v36  ;;  %336 = vpow2.f32 %v106_v49  ;;  %v112_v55 = vmul.f32 1.442695, %v539_v44 }
  0x35   :  { %v97_v56 = vmax.f32 %v94_v47, %v96_v48  ;;  %v553_v57 = vsub.f32 %v53_v9, %v90_v46  ;;  %v114_v58 = vmul.f32 1.442695, %v541_v45  ;;  %v556_v59 = vsub.f32 %v54_v10, %v90_v46  ;;  %p452_p6 = pnand %p451_p5, %p445_p2 }
  0x36   :  { %338 = vpow2.f32 %v108_v51  ;;  %v116_v60 = vmul.f32 1.442695, %v544_v50  ;;  %v559_v61 = vsub.f32 %v55_v11, %v90_v46  ;;  %v118_v62 = vmul.f32 1.442695, %v547_v52 }
  0x37   :  { %340 = vpow2.f32 %v110_v53  ;;  %v562_v63 = vsub.f32 %v56_v16, %v90_v46  ;;  %v120_v0 = vmul.f32 1.442695, %v550_v54  ;;  %v565_v1 = vsub.f32 %v57_v17, %v97_v56 }
  0x38   :  { %342 = vpow2.f32 %v112_v55  ;;  %v122_v2 = vmul.f32 1.442695, %v553_v57  ;;  %v568_v3 = vsub.f32 %v58_v22, %v97_v56  ;;  %v124_v4 = vmul.f32 1.442695, %v556_v59 }
  0x39   :  { %344 = vpow2.f32 %v114_v58  ;;  %v571_v5 = vsub.f32 %v59_v27, %v97_v56  ;;  %v126_v6 = vmul.f32 1.442695, %v559_v61  ;;  %v574_v7 = vsub.f32 %v60_v28, %v97_v56 }
  0x3a   :  { %346 = vpow2.f32 %v116_v60  ;;  %v128_v8 = vmul.f32 1.442695, %v562_v63  ;;  %v130_v9 = vmul.f32 1.442695, %v565_v1  ;;  %v132_v11 = vmul.f32 1.442695, %v568_v3 }
  0x3b   :  { %348 = vpow2.f32 %v118_v62  ;;  %v134_v12 = vmul.f32 1.442695, %v571_v5  ;;  %v136_v15 = vmul.f32 1.442695, %v574_v7 }
  0x3c   :  { %350 = vpow2.f32 %v120_v0 }
  0x3d   :  { %352 = vpow2.f32 %v122_v2 }
  0x3e   :  { %v337_v10 = vpop.eup %336  ;;  %354 = vpow2.f32 %v124_v4 }
  0x3f   :  { %356 = vpow2.f32 %v126_v6  ;;  %v138_v13 = vsel %vm61_vm0, %v337_v10, 0.0 }
  0x40   :  { %v339_v14 = vpop.eup %338  ;;  %358 = vpow2.f32 %v128_v8 }
  0x41   :  { %v341_v16 = vpop.eup %340  ;;  %360 = vpow2.f32 %v130_v9  ;;  %v139_v17 = vsel %vm61_vm0, %v339_v14, 0.0 }
  0x42   :  { %v343_v18 = vpop.eup %342  ;;  %362 = vpow2.f32 %v132_v11  ;;  %v140_v19 = vadd.f32 %v139_v17, %v138_v13  ;;  %v141_v20 = vsel %vm61_vm0, %v341_v16, 0.0 }
  0x43   :  { %v345_v21 = vpop.eup %344  ;;  %364 = vpow2.f32 %v134_v12  ;;  %v143_v26 = vsel %vm61_vm0, %v343_v18, 0.0 }
  0x44   :  { %v347_v22 = vpop.eup %346  ;;  %366 = vpow2.f32 %v136_v15  ;;  %v142_v23 = vadd.f32 %v141_v20, %v140_v19  ;;  %v145_v24 = vsel %vm61_vm0, %v345_v21, 0.0 }
  0x45   :  { %v349_v25 = vpop.eup %348  ;;  %v146_v27 = vsel %vm61_vm0, %v347_v22, 0.0 }
  0x46   :  { %v351_v28 = vpop.eup %350  ;;  %v147_v29 = vadd.f32 %v146_v27, %v145_v24  ;;  %v148_v30 = vsel %vm61_vm0, %v349_v25, 0.0  ;;  %v144_v33 = vadd.f32 %v143_v26, %v142_v23 }
  0x47   :  { %v353_v31 = vpop.eup %352  ;;  %v150_v35 = vsel %vm61_vm0, %v351_v28, 0.0 }
  0x48   :  { %v355_v32 = vpop.eup %354  ;;  %v149_v34 = vadd.f32 %v148_v30, %v147_v29  ;;  %v152_v36 = vsel %vm61_vm0, %v353_v31, 0.0  ;;  %368 = vrcp.f32 %v144_v33 }
  0x49   :  { %v357_v39 = vpop.eup %356  ;;  %v153_v41 = vsel %vm61_vm0, %v355_v32, 0.0 }
  0x4a   :  { %v359_v42 = vpop.eup %358  ;;  %v154_v43 = vadd.f32 %v153_v41, %v152_v36  ;;  %v155_v46 = vsel %vm61_vm0, %v357_v39, 0.0  ;;  %v151_v48 = vadd.f32 %v150_v35, %v149_v34 }
  0x4b   :  { %v361_v47 = vpop.eup %360  ;;  %v157_v49 = vsel %vm61_vm0, %v359_v42, 0.0 }
  0x4c   :  { %v363_v51 = vpop.eup %362  ;;  %v156_v53 = vadd.f32 %v155_v46, %v154_v43  ;;  %v159_v55 = vsel %vm61_vm0, %v361_v47, 0.0  ;;  %370 = vrcp.f32 %v151_v48 }
  0x4d   :  { %v365_v56 = vpop.eup %364  ;;  %v160_v58 = vsel %vm61_vm0, %v363_v51, 0.0 }
  0x4e   :  { %v367_v60 = vpop.eup %366  ;;  %v158_v62 = vadd.f32 %v157_v49, %v156_v53  ;;  %v161_v0 = vadd.f32 %v160_v58, %v159_v55  ;;  %v162_v2 = vsel %vm61_vm0, %v365_v56, 0.0 }
  0x4f   :  { %v164_v4 = vsel %vm61_vm0, %v367_v60, 0.0 }
  0x50   :  { %v163_v6 = vadd.f32 %v162_v2, %v161_v0  ;;  %372 = vrcp.f32 %v158_v62 }
  0x52   :  { %v165_v8 = vadd.f32 %v164_v4, %v163_v6  ;;  %v369_v9 = vpop.eup %368 }
  0x53   :  { %v597_v12 = vmul.f32 %v369_v9, %v337_v10  ;;  %v599_v13 = vmul.f32 %v369_v9, %v339_v14  ;;  %v601_v15 = vmul.f32 %v369_v9, %v341_v16  ;;  %v603_v19 = vmul.f32 %v369_v9, %v343_v18 }
  0x54   :  { %374 = vrcp.f32 %v165_v8 }
  0x55   :  { %376 = vlog2.f32 %v144_v33 }
  0x56   :  { %v371_v11 = vpop.eup %370  ;;  %378 = vlog2.f32 %v151_v48 }
  0x57   :  { %v613_v27 = vmul.f32 %v371_v11, %v345_v21  ;;  %v615_v10 = vmul.f32 %v371_v11, %v347_v22  ;;  %v617_v14 = vmul.f32 %v371_v11, %v349_v25  ;;  %v619_v16 = vmul.f32 %v371_v11, %v351_v28 }
  0x58   :  { %380 = vlog2.f32 %v158_v62 }
  0x59   :  { %382 = vlog2.f32 %v165_v8 }
  0x5a   :  { %v373_v17 = vpop.eup %372 }
  0x5b   :  { %v605_v20 = vmul.f32 %v373_v17, %v353_v31  ;;  %v607_v23 = vmul.f32 %v373_v17, %v355_v32  ;;  %v609_v24 = vmul.f32 %v373_v17, %v357_v39  ;;  %v611_v26 = vmul.f32 %v373_v17, %v359_v42 }
  0x5d   :  { %v214_v18 = vadd.f32 %v605_v20, %v597_v12  ;;  %v215_v29 = vadd.f32 %v607_v23, %v599_v13  ;;  %v216_v30 = vadd.f32 %v609_v24, %v601_v15  ;;  %v217_v21 = vadd.f32 %v611_v26, %v603_v19 }
  0x5e   :  { %v375_v31 = vpop.eup %374 }
  0x5f   :  { %v629_v22 = vmul.f32 %v375_v31, %v361_v47  ;;  %v631_v25 = vmul.f32 %v375_v31, %v363_v51  ;;  %v633_v28 = vmul.f32 %v375_v31, %v365_v56  ;;  %v635_v32 = vmul.f32 %v375_v31, %v367_v60  ;;  %v377_v48 = vpop.eup %376 }
  0x60   :  { %v222_v33 = vmul.f32 0.5, %v214_v18  ;;  %v223_v34 = vmul.f32 0.5, %v215_v29  ;;  %v224_v35 = vmul.f32 0.5, %v216_v30  ;;  %v225_v43 = vmul.f32 0.5, %v217_v21  ;;  %v379_v60 = vpop.eup %378 }
  0x61   :  { %v218_v36 = vadd.f32 %v629_v22, %v613_v27  ;;  %v219_v39 = vadd.f32 %v631_v25, %v615_v10  ;;  %v220_v41 = vadd.f32 %v633_v28, %v617_v14  ;;  %v221_v42 = vadd.f32 %v635_v32, %v619_v16 }
  0x62   :  { %v230_v51 = vmax.f32 %v222_v33, 1e-07  ;;  %v231_v53 = vmax.f32 %v223_v34, 1e-07  ;;  %v232_v56 = vmax.f32 %v224_v35, 1e-07  ;;  %v381_v2 = vpop.eup %380 }
  0x63   :  { %v226_v46 = vmul.f32 0.5, %v218_v36  ;;  %v227_v47 = vmul.f32 0.5, %v219_v39  ;;  %v228_v49 = vmul.f32 0.5, %v220_v41  ;;  %v229_v55 = vmul.f32 0.5, %v221_v42  ;;  %v383_v8 = vpop.eup %382 }
  0x64   :  { %v233_v58 = vmax.f32 %v225_v43, 1e-07  ;;  %384 = vlog2.f32 %v230_v51  ;;  %v191_v9 = vmul.f32 0.6931472, %v377_v48  ;;  %v193_v11 = vmul.f32 0.6931472, %v379_v60 }
  0x65   :  { %v234_v62 = vmax.f32 %v226_v46, 1e-07  ;;  %v235_v0 = vmax.f32 %v227_v47, 1e-07  ;;  %386 = vlog2.f32 %v231_v53  ;;  %v236_v4 = vmax.f32 %v228_v49, 1e-07 }
  0x66   :  { %388 = vlog2.f32 %v232_v56  ;;  %v237_v6 = vmax.f32 %v229_v55, 1e-07  ;;  %v203_v17 = vmul.f32 0.6931472, %v381_v2  ;;  %v205_v18 = vmul.f32 0.6931472, %v383_v8 }
  0x67   :  { %390 = vlog2.f32 %v233_v58  ;;  %v194_v29 = vsub.f32 %v530_v37, %v191_v9  ;;  %v195_v30 = vsub.f32 %v532_v38, %v191_v9  ;;  %v196_v31 = vsub.f32 %v535_v40, %v191_v9 }
  0x68   :  { %392 = vlog2.f32 %v234_v62  ;;  %v197_v21 = vsub.f32 %v539_v44, %v191_v9  ;;  %v198_v34 = vsub.f32 %v541_v45, %v193_v11  ;;  %v199_v35 = vsub.f32 %v544_v50, %v193_v11 }
  0x69   :  { %394 = vlog2.f32 %v235_v0  ;;  %v206_v36 = vsub.f32 %v553_v57, %v203_v17  ;;  %v207_v39 = vsub.f32 %v556_v59, %v203_v17  ;;  %v200_v42 = vsub.f32 %v547_v52, %v193_v11 }
  0x6a   :  { %396 = vlog2.f32 %v236_v4  ;;  %v201_v37 = vsub.f32 %v550_v54, %v193_v11  ;;  %v208_v38 = vsub.f32 %v559_v61, %v203_v17  ;;  %v209_v44 = vsub.f32 %v562_v63, %v203_v17 }
  0x6b   :  { %398 = vlog2.f32 %v237_v6  ;;  %v210_v46 = vsub.f32 %v565_v1, %v205_v18  ;;  %v211_v45 = vsub.f32 %v568_v3, %v205_v18  ;;  %v212_v57 = vsub.f32 %v571_v5, %v205_v18 }
  0x6c   :  { %v213_v59 = vsub.f32 %v574_v7, %v205_v18 }
  0x6e   :  { %v385_v33 = vpop.eup %384 }
  0x6f   :  { %v387_v41 = vpop.eup %386  ;;  %v239_v43 = vmul.f32 0.6931472, %v385_v33 }
  0x70   :  { %v389_v40 = vpop.eup %388  ;;  %v241_v50 = vmul.f32 0.6931472, %v387_v41 }
  0x71   :  { %v391_v47 = vpop.eup %390  ;;  %v243_v48 = vmul.f32 0.6931472, %v389_v40  ;;  %v254_v52 = vsub.f32 %v194_v29, %v239_v43  ;;  %v270_v61 = vsub.f32 %v206_v36, %v239_v43 }
  0x72   :  { %v393_v49 = vpop.eup %392  ;;  %v245_v54 = vmul.f32 0.6931472, %v391_v47  ;;  %v255_v51 = vsub.f32 %v195_v30, %v241_v50  ;;  %v271_v53 = vsub.f32 %v207_v39, %v241_v50 }
  0x73   :  { %v395_v55 = vpop.eup %394  ;;  %v247_v56 = vmul.f32 0.6931472, %v393_v49  ;;  %v256_v63 = vsub.f32 %v196_v31, %v243_v48  ;;  %v262_v1 = vmul.f32 %v254_v52, %v597_v12  ;;  %v272_v58 = vsub.f32 %v208_v38, %v243_v48  ;;  %v311_v49 = vld [vmem:[#allocation7] sm:$0x3] }
  0x74   :  { %v397_v3 = vpop.eup %396  ;;  %v249_v60 = vmul.f32 0.6931472, %v395_v55  ;;  %v257_v62 = vsub.f32 %v197_v21, %v245_v54  ;;  %v263_v5 = vmul.f32 %v255_v51, %v599_v13  ;;  %v273_v0 = vsub.f32 %v209_v44, %v245_v54 }
  0x75   :  { %v399_v7 = vpop.eup %398  ;;  %v251_v2 = vmul.f32 0.6931472, %v397_v3  ;;  %v258_v4 = vsub.f32 %v198_v34, %v247_v56  ;;  %v264_v6 = vmul.f32 %v256_v63, %v601_v15  ;;  %v274_v8 = vsub.f32 %v210_v46, %v247_v56 }
  0x76   :  { %v253_v9 = vmul.f32 0.6931472, %v399_v7  ;;  %v259_v11 = vsub.f32 %v199_v35, %v249_v60  ;;  %v265_v17 = vmul.f32 %v257_v62, %v603_v19  ;;  %v275_v18 = vsub.f32 %v211_v45, %v249_v60 }
  0x77   :  { %v260_v29 = vsub.f32 %v200_v42, %v251_v2  ;;  %v266_v12 = vmul.f32 %v258_v4, %v613_v27  ;;  %v276_v30 = vsub.f32 %v212_v57, %v251_v2  ;;  %v278_v31 = vmul.f32 %v270_v61, %v605_v20 }
  0x78   :  { %v261_v21 = vsub.f32 %v201_v37, %v253_v9  ;;  %v267_v13 = vmul.f32 %v259_v11, %v615_v10  ;;  %v277_v33 = vsub.f32 %v213_v59, %v253_v9  ;;  %v279_v34 = vmul.f32 %v271_v53, %v607_v23 }
  0x79   :  { %v268_v15 = vmul.f32 %v260_v29, %v617_v14  ;;  %v280_v36 = vmul.f32 %v272_v58, %v609_v24  ;;  %v281_v35 = vmul.f32 %v273_v0, %v611_v26  ;;  %v282_v19 = vmul.f32 %v274_v8, %v629_v22 }
  0x7a   :  { %v269_v39 = vmul.f32 %v261_v21, %v619_v16  ;;  %v283_v27 = vmul.f32 %v275_v18, %v631_v25  ;;  %v284_v20 = vmul.f32 %v276_v30, %v633_v28  ;;  %v285_v41 = vmul.f32 %v277_v33, %v635_v32 }
  0x7b   :  { %v286_v10 = vadd.f32 %v278_v31, %v262_v1  ;;  %v287_v42 = vadd.f32 %v279_v34, %v263_v5  ;;  %v288_v37 = vadd.f32 %v280_v36, %v264_v6  ;;  %v289_v23 = vadd.f32 %v281_v35, %v265_v17 }
  0x7c   :  { %v290_v38 = vadd.f32 %v282_v19, %v266_v12  ;;  %v291_v14 = vadd.f32 %v283_v27, %v267_v13  ;;  %v292_v43 = vadd.f32 %v284_v20, %v268_v15  ;;  %v293_v24 = vadd.f32 %v285_v41, %v269_v39 }
  0x7d   :  { %v294_v26 = vsel %vm61_vm0, %v286_v10, 0.0  ;;  %v295_v22 = vsel %vm61_vm0, %v287_v42, 0.0  ;;  %v297_v16 = vsel %vm61_vm0, %v288_v37, 0.0  ;;  %v299_v44 = vsel %vm61_vm0, %v289_v23, 0.0 }
  0x7e   :  { %v296_v40 = vadd.f32 %v295_v22, %v294_v26  ;;  %v301_v25 = vsel %vm61_vm0, %v290_v38, 0.0  ;;  %v302_v28 = vsel %vm61_vm0, %v291_v14, 0.0  ;;  %v304_v32 = vsel %vm61_vm0, %v292_v43, 0.0 }
  0x7f   :  { %v303_v46 = vadd.f32 %v302_v28, %v301_v25  ;;  %v306_v50 = vsel %vm61_vm0, %v293_v24, 0.0 }
  0x80   :  { %v298_v45 = vadd.f32 %v297_v16, %v296_v40 }
  0x81   :  { %v305_v47 = vadd.f32 %v304_v32, %v303_v46 }
  0x82   :  { %v300_v57 = vadd.f32 %v299_v44, %v298_v45 }
  0x83   :  { %v307_v59 = vadd.f32 %v306_v50, %v305_v47 }
  0x84   :  { %v308_v48 = vsel %vm61_vm0, %v300_v57, 0.0 }
  0x85   :  { %v309_v52 = vsel %vm61_vm0, %v307_v59, 0.0 }
  0x86   :  { %v310_v54 = vadd.f32 %v309_v52, %v308_v48 }
  0x88   :  { %v312_v51 = vadd.f32 %v311_v49, %v310_v54 }
  0x8a   :  { %313 = vst [vmem:[#allocation7] sm:$0x3] %v312_v51 }
  0x8b   :  { %455 = shalt.err (!%p452_p6)
}
  0x8c   :  { %s456_s10 = scalar_lea.hbm %s701_s2, 32 }
  0x8d   :  { %p457_p7 = scmp.ne.s32.totalorder %s701_s2, %s456_s10  ;;  %p460_p8 = scmp.lt.u32.totalorder %s456_s10, %s701_s2 }
  0x8f   :  { %p462_p9 = pnand %p460_p8, %p457_p7 }
  0x91   :  { %465 = shalt.err (!%p462_p9)
}
  0x92   :  { %323 = dma.vmem_to_hbm [thread:$0]  %s321_s6, 32, %s701_s2, [#allocation4]  }
  0x93   :  { %470 = dma.done.wait [#allocation4], 32  }
  0x94   :  { %471 = vsyncadd [#allocation4], 4294967264 }
  0x95   :  { %327 = vsyncpa [#allocation3], 1 }
  0x96   :  { %328 = vsyncpa [#allocation6], 1 }
  0x97   :  { %329 = vsyncpa [#allocation4], 1 }

</bundles_post_ra>
